<compile_context>
chip_gen: v7x
topology: tpu7x:2x2x1
jax: 0.10.0
libtpu: 0.0.40
codegen_flags: <defaults>
</compile_context>

<pallas_src>
import functools

import jax
import jax.numpy as jnp
from jax.experimental import pallas as pl
from jax.experimental.pallas import tpu as pltpu

N_INPUTS = 14
_LANE = 128


def _round_up(n, m):
    return ((n + m - 1) // m) * m


def _mlp_kernel(n_layers_total, slab, n_slabs, mxu_dtype, *refs):
    """Fused MLP forward on one lane-dense (N_INPUTS, batch_tile) input block.

    refs = (x_ref, w0, b0, w1, b1, ..., o_ref)
      x_ref : (N_INPUTS, batch_tile)        input dtype (batch on lanes)
      wK    : (out_features, in_features)   f32, resident (PyTorch Linear layout)
      bK    : (out_features, 1)             f32, resident
      o_ref : (1, batch_tile)               f32, lane-dense output row
    """
    x_ref = refs[0]
    o_ref = refs[-1]
    param_refs = refs[1:-1]

    # Hoist the tiny resident parameters out of the slab loop; cast the matmul
    # operands once per grid step to bf16 (MXU-native on v5e/v6e/v7x).  Biases
    # and all element-wise math stay f32.
    ws = [param_refs[2 * li][...].astype(mxu_dtype) for li in range(n_layers_total)]
    bs = [param_refs[2 * li + 1][...] for li in range(n_layers_total)]

    # Process the tile in lane slabs so every per-layer (n_units, slab) f32
    # intermediate stays in vregs (no VMEM spill traffic on the single vst
    # slot of v5e/v6e).  Offsets are static Python ints -> zero-cost slices.
    for s in range(n_slabs):
        c0 = s * slab
        h = x_ref[:, c0:c0 + slab].astype(mxu_dtype)              # (F, slab)
        out = None
        for li in range(n_layers_total):
            acc = jnp.dot(ws[li], h, preferred_element_type=jnp.float32)
            acc = acc + bs[li]                                    # f32 bias add
            if li < n_layers_total - 1:
                h = jnp.maximum(acc, 0.0).astype(mxu_dtype)       # ReLU (f32) -> next MXU operand
            else:
                # Sigmoid via tanh: numerically stable, runs on the EUP (f32).
                out = 0.5 * (jnp.tanh(0.5 * acc) + 1.0)
        o_ref[:, c0:c0 + slab] = out.astype(o_ref.dtype)          # (1, slab) lane-dense


def _choose_tiles(batch, batch_tile, slab):
    if batch_tile is None:
        # ~16K-row tiles move ~0.9 MiB/step of f32 input, amortizing the
        # ~0.35us per-grid-step overhead, while aiming for >= 4 grid steps so
        # ("parallel",) can shard the batch across both v7x TensorCores.
        batch_tile = min(16384, max(_LANE, _round_up(pl.cdiv(batch, 4), _LANE)))
    else:
        batch_tile = max(_LANE, _round_up(int(batch_tile), _LANE))

    slab = 512 if slab is None else max(_LANE, _round_up(int(slab), _LANE))
    slab = min(slab, batch_tile)
    while batch_tile % slab:          # keep slab a multiple of 128 dividing the tile
        slab -= _LANE
    slab = max(slab, _LANE)
    return batch_tile, slab


@functools.partial(jax.jit, static_argnames=("batch_tile", "slab", "mxu_dtype"))
def net_forward_t(x_t, params, batch_tile=None, slab=None, mxu_dtype=jnp.bfloat16):
    """Forward pass on a pre-transposed input.

    Args:
      x_t: (N_INPUTS, batch) array (batch on the lane dimension).
      params: list of (W, b) with W (out_features, in_features), b (out_features, 1).
      batch_tile: rows of the original batch per grid step (rounded to 128).
      slab: lane-slab width inside the kernel (rounded to 128).
      mxu_dtype: operand dtype for the MXU matmuls (bf16 default; use
                 jnp.float32 for a bit-accurate-but-slower path).
    Returns:
      (batch, 1) float32 array.
    """
    f, batch = x_t.shape
    assert f == N_INPUTS, f"x_t must have shape ({N_INPUTS}, batch)"
    n_layers_total = len(params)

    batch_tile, slab = _choose_tiles(batch, batch_tile, slab)
    n_tiles = pl.cdiv(batch, batch_tile)
    b_pad = n_tiles * batch_tile
    if b_pad != batch:
        x_t = jnp.pad(x_t, ((0, 0), (0, b_pad - batch)))
    n_slabs = batch_tile // slab

    flat_args = [x_t]
    in_specs = [pl.BlockSpec((N_INPUTS, batch_tile), lambda i: (0, i))]
    for (w, b) in params:
        # Tiny resident parameters; full-array blocks with a constant index_map
        # are fetched once and reused across all grid steps.
        flat_args.append(w.astype(jnp.float32))
        in_specs.append(pl.BlockSpec(w.shape, lambda i: (0, 0)))
        flat_args.append(b.astype(jnp.float32))
        in_specs.append(pl.BlockSpec(b.shape, lambda i: (0, 0)))

    kernel = functools.partial(_mlp_kernel, n_layers_total, slab, n_slabs, mxu_dtype)

    out_row = pl.pallas_call(
        kernel,
        out_shape=jax.ShapeDtypeStruct((1, b_pad), jnp.float32),
        grid_spec=pltpu.PrefetchScalarGridSpec(
            num_scalar_prefetch=0,
            grid=(n_tiles,),
            in_specs=in_specs,
            out_specs=pl.BlockSpec((1, batch_tile), lambda i: (0, i)),
        ),
        compiler_params=pltpu.CompilerParams(
            dimension_semantics=("parallel",),
        ),
    )(*flat_args)

    # (1, b_pad) lane-major row -> (batch, 1) column expected by the module API
    # (free reshape: same linear layout), then drop padded rows.
    return out_row.reshape(b_pad, 1)[:batch]


@functools.partial(jax.jit, static_argnames=("batch_tile", "slab", "mxu_dtype"))
def net_forward(x, params, batch_tile=None, slab=None, mxu_dtype=jnp.bfloat16):
    """x: (batch, N_INPUTS) -> (batch, 1), matching the PyTorch module API.

    NOTE: for peak throughput the upstream producer should hand the kernel the
    already-transposed (N_INPUTS, batch) array and call `net_forward_t`
    directly; the transpose below is one extra (fused) XLA pass over x.
    """
    assert x.ndim == 2 and x.shape[1] == N_INPUTS, \
        f"x must have shape (batch, {N_INPUTS})"
    return net_forward_t(jnp.transpose(x), params,
                         batch_tile=batch_tile, slab=slab, mxu_dtype=mxu_dtype)


def init_params(key, n_layers, n_units):
    """PyTorch nn.Linear-style init: U(-1/sqrt(fan_in), 1/sqrt(fan_in)).

    Weights stored as (out_features, in_features), biases as (out_features, 1).
    """
    dims = [N_INPUTS] + list(n_units) + [1]
    params = []
    for i in range(len(dims) - 1):
        fan_in, fan_out = dims[i], dims[i + 1]
        key, kw, kb = jax.random.split(key, 3)
        bound = 1.0 / (fan_in ** 0.5)
        w = jax.random.uniform(kw, (fan_out, fan_in), jnp.float32, -bound, bound)
        b = jax.random.uniform(kb, (fan_out, 1), jnp.float32, -bound, bound)
        params.append((w, b))
    return params


def reference_forward(x, params):
    """Pure-JAX reference matching the PyTorch forward semantics (high precision)."""
    h = x.astype(jnp.float32)
    for i, (w, b) in enumerate(params):
        h = jnp.dot(h, w.T, precision=jax.lax.Precision.HIGHEST) + b.T
        if i < len(params) - 1:
            h = jnp.maximum(h, 0.0)       # ReLU hidden activation
        else:
            h = jax.nn.sigmoid(h)         # Sigmoid output activation
    return h


if __name__ == "__main__":
    key = jax.random.PRNGKey(0)
    k_x, k_x2, k_p = jax.random.split(key, 3)

    n_layers = 2
    n_units = [32, 32]
    params = init_params(k_p, n_layers, n_units)

    # -- bf16-MXU fast path, exercising multiple grid steps and lane slabs
    #    (batch 2048, tile 1024, slab 512 -> 2 tiles x 2 slabs). --
    batch = 2048
    x = jax.random.normal(k_x, (batch, N_INPUTS), jnp.float32)
    out = jax.block_until_ready(net_forward(x, params, batch_tile=1024, slab=512))
    assert out.shape == (batch, 1)
    ref = reference_forward(x, params)
    assert jnp.allclose(out, ref, atol=1e-2, rtol=1e-2), \
        f"bf16-MXU path mismatch: max|d|={jnp.max(jnp.abs(out - ref))}"

    # -- exact f32-operand path with an uneven batch (checks padding/slicing). --
    x2 = jax.random.normal(k_x2, (37, N_INPUTS), jnp.float32)
    out2 = jax.block_until_ready(net_forward(x2, params, mxu_dtype=jnp.float32))
    ref2 = reference_forward(x2, params)
    assert out2.shape == (37, 1)
    assert jnp.allclose(out2, ref2, atol=1e-4, rtol=1e-4), \
        f"f32 path mismatch: max|d|={jnp.max(jnp.abs(out2 - ref2))}"

    # -- default tiling via the pre-transposed (zero-extra-pass) entry point. --
    out3 = jax.block_until_ready(net_forward_t(jnp.transpose(x), params))
    assert out3.shape == (batch, 1)
    assert jnp.allclose(out3, ref, atol=1e-2, rtol=1e-2), \
        f"transposed entry point mismatch: max|d|={jnp.max(jnp.abs(out3 - ref))}"

    print("KERNEL_OK")
</pallas_src>

<mosaic_0001>
module attributes {stable_mosaic.version = 11 : i64} {
  func.func @_mlp_kernel(%arg0: i32, %arg1: memref<14x1024xf32, #tpu.memory_space<vmem>>, %arg2: memref<32x14xf32, #tpu.memory_space<vmem>>, %arg3: memref<32x1xf32, #tpu.memory_space<vmem>>, %arg4: memref<32x32xf32, #tpu.memory_space<vmem>>, %arg5: memref<32x1xf32, #tpu.memory_space<vmem>>, %arg6: memref<1x32xf32, #tpu.memory_space<vmem>>, %arg7: memref<1x1xf32, #tpu.memory_space<vmem>>, %arg8: memref<1x1024xf32, #tpu.memory_space<vmem>>) attributes {dimension_semantics = [#tpu.dimension_semantics<parallel>], iteration_bounds = array<i64: 2>, scalar_prefetch = 0 : i64, scratch_operands = 0 : i64, tpu.core_type = #tpu.core_type<tc>, window_params = [{transform_indices = @transform_0, window_bounds = array<i64: 14, 1024>}, {pipeline_mode = #tpu.pipeline_mode<synchronous>, transform_indices = @transform_1, window_bounds = array<i64: 32, 14>}, {pipeline_mode = #tpu.pipeline_mode<synchronous>, transform_indices = @transform_2, window_bounds = array<i64: 32, 1>}, {pipeline_mode = #tpu.pipeline_mode<synchronous>, transform_indices = @transform_3, window_bounds = array<i64: 32, 32>}, {pipeline_mode = #tpu.pipeline_mode<synchronous>, transform_indices = @transform_4, window_bounds = array<i64: 32, 1>}, {pipeline_mode = #tpu.pipeline_mode<synchronous>, transform_indices = @transform_5, window_bounds = array<i64: 1, 32>}, {pipeline_mode = #tpu.pipeline_mode<synchronous>, transform_indices = @transform_6, window_bounds = array<i64: 1, 1>}, {transform_indices = @transform_7, window_bounds = array<i64: 1, 1024>}]} {
    %c0 = arith.constant 0 : index
    %c0_0 = arith.constant 0 : index
    %0 = vector.load %arg2[%c0, %c0_0] : memref<32x14xf32, #tpu.memory_space<vmem>>, vector<32x14xf32>
    %1 = arith.truncf %0 : vector<32x14xf32> to vector<32x14xbf16>
    %c0_1 = arith.constant 0 : index
    %c0_2 = arith.constant 0 : index
    %2 = vector.load %arg4[%c0_1, %c0_2] : memref<32x32xf32, #tpu.memory_space<vmem>>, vector<32x32xf32>
    %3 = arith.truncf %2 : vector<32x32xf32> to vector<32x32xbf16>
    %c0_3 = arith.constant 0 : index
    %c0_4 = arith.constant 0 : index
    %4 = vector.load %arg6[%c0_3, %c0_4] : memref<1x32xf32, #tpu.memory_space<vmem>>, vector<1x32xf32>
    %5 = arith.truncf %4 : vector<1x32xf32> to vector<1x32xbf16>
    %c0_5 = arith.constant 0 : index
    %c0_6 = arith.constant 0 : index
    %6 = vector.load %arg3[%c0_5, %c0_6] : memref<32x1xf32, #tpu.memory_space<vmem>>, vector<32x1xf32>
    %c0_7 = arith.constant 0 : index
    %c0_8 = arith.constant 0 : index
    %7 = vector.load %arg5[%c0_7, %c0_8] : memref<32x1xf32, #tpu.memory_space<vmem>>, vector<32x1xf32>
    %c0_9 = arith.constant 0 : index
    %c0_10 = arith.constant 0 : index
    %8 = vector.load %arg7[%c0_9, %c0_10] : memref<1x1xf32, #tpu.memory_space<vmem>>, vector<1x1xf32>
    %c0_11 = arith.constant 0 : index
    %c0_12 = arith.constant 0 : index
    %9 = vector.load %arg1[%c0_11, %c0_12] : memref<14x1024xf32, #tpu.memory_space<vmem>>, vector<14x512xf32>
    %10 = arith.truncf %9 : vector<14x512xf32> to vector<14x512xbf16>
    %cst = arith.constant dense<0.000000e+00> : vector<32x512xf32>
    %11 = tpu.matmul %1, %10, %cst {dimension_numbers = #tpu.dot_dimension_numbers<[1], [0], [0], [1], [0, 0, 1, 1], [], []>} : vector<32x14xbf16>, vector<14x512xbf16>, vector<32x512xf32> -> vector<32x512xf32>
    %12 = vector.broadcast %6 : vector<32x1xf32> to vector<32x512xf32>
    %13 = arith.addf %11, %12 : vector<32x512xf32>
    %cst_13 = arith.constant 0.000000e+00 : f32
    %14 = vector.broadcast %cst_13 : f32 to vector<32x512xf32>
    %15 = arith.maximumf %13, %14 : vector<32x512xf32>
    %16 = arith.truncf %15 : vector<32x512xf32> to vector<32x512xbf16>
    %cst_14 = arith.constant dense<0.000000e+00> : vector<32x512xf32>
    %17 = tpu.matmul %3, %16, %cst_14 {dimension_numbers = #tpu.dot_dimension_numbers<[1], [0], [0], [1], [0, 0, 1, 1], [], []>} : vector<32x32xbf16>, vector<32x512xbf16>, vector<32x512xf32> -> vector<32x512xf32>
    %18 = vector.broadcast %7 : vector<32x1xf32> to vector<32x512xf32>
    %19 = arith.addf %17, %18 : vector<32x512xf32>
    %cst_15 = arith.constant 0.000000e+00 : f32
    %20 = vector.broadcast %cst_15 : f32 to vector<32x512xf32>
    %21 = arith.maximumf %19, %20 : vector<32x512xf32>
    %22 = arith.truncf %21 : vector<32x512xf32> to vector<32x512xbf16>
    %cst_16 = arith.constant dense<0.000000e+00> : vector<1x512xf32>
    %23 = tpu.matmul %5, %22, %cst_16 {dimension_numbers = #tpu.dot_dimension_numbers<[1], [0], [0], [1], [0, 0, 1, 1], [], []>} : vector<1x32xbf16>, vector<32x512xbf16>, vector<1x512xf32> -> vector<1x512xf32>
    %24 = vector.broadcast %8 : vector<1x1xf32> to vector<1x512xf32>
    %25 = arith.addf %23, %24 : vector<1x512xf32>
    %cst_17 = arith.constant 5.000000e-01 : f32
    %26 = vector.broadcast %cst_17 : f32 to vector<1x512xf32>
    %27 = arith.mulf %26, %25 : vector<1x512xf32>
    %28 = math.tanh %27 : vector<1x512xf32>
    %cst_18 = arith.constant 1.000000e+00 : f32
    %29 = vector.broadcast %cst_18 : f32 to vector<1x512xf32>
    %30 = arith.addf %28, %29 : vector<1x512xf32>
    %cst_19 = arith.constant 5.000000e-01 : f32
    %31 = vector.broadcast %cst_19 : f32 to vector<1x512xf32>
    %32 = arith.mulf %31, %30 : vector<1x512xf32>
    %c0_20 = arith.constant 0 : index
    %c0_21 = arith.constant 0 : index
    %33 = vector.load %arg8[%c0_20, %c0_21] : memref<1x1024xf32, #tpu.memory_space<vmem>>, vector<1x512xf32>
    tpu.vector_store %arg8[%c0_20, %c0_21], %32 {strides = array<i32>} : memref<1x1024xf32, #tpu.memory_space<vmem>>, vector<1x512xf32>,
    %c0_22 = arith.constant 0 : index
    %c512 = arith.constant 512 : index
    %34 = vector.load %arg1[%c0_22, %c512] : memref<14x1024xf32, #tpu.memory_space<vmem>>, vector<14x512xf32>
    %35 = arith.truncf %34 : vector<14x512xf32> to vector<14x512xbf16>
    %cst_23 = arith.constant dense<0.000000e+00> : vector<32x512xf32>
    %36 = tpu.matmul %1, %35, %cst_23 {dimension_numbers = #tpu.dot_dimension_numbers<[1], [0], [0], [1], [0, 0, 1, 1], [], []>} : vector<32x14xbf16>, vector<14x512xbf16>, vector<32x512xf32> -> vector<32x512xf32>
    %37 = vector.broadcast %6 : vector<32x1xf32> to vector<32x512xf32>
    %38 = arith.addf %36, %37 : vector<32x512xf32>
    %cst_24 = arith.constant 0.000000e+00 : f32
    %39 = vector.broadcast %cst_24 : f32 to vector<32x512xf32>
    %40 = arith.maximumf %38, %39 : vector<32x512xf32>
    %41 = arith.truncf %40 : vector<32x512xf32> to vector<32x512xbf16>
    %cst_25 = arith.constant dense<0.000000e+00> : vector<32x512xf32>
    %42 = tpu.matmul %3, %41, %cst_25 {dimension_numbers = #tpu.dot_dimension_numbers<[1], [0], [0], [1], [0, 0, 1, 1], [], []>} : vector<32x32xbf16>, vector<32x512xbf16>, vector<32x512xf32> -> vector<32x512xf32>
    %43 = vector.broadcast %7 : vector<32x1xf32> to vector<32x512xf32>
    %44 = arith.addf %42, %43 : vector<32x512xf32>
    %cst_26 = arith.constant 0.000000e+00 : f32
    %45 = vector.broadcast %cst_26 : f32 to vector<32x512xf32>
    %46 = arith.maximumf %44, %45 : vector<32x512xf32>
    %47 = arith.truncf %46 : vector<32x512xf32> to vector<32x512xbf16>
    %cst_27 = arith.constant dense<0.000000e+00> : vector<1x512xf32>
    %48 = tpu.matmul %5, %47, %cst_27 {dimension_numbers = #tpu.dot_dimension_numbers<[1], [0], [0], [1], [0, 0, 1, 1], [], []>} : vector<1x32xbf16>, vector<32x512xbf16>, vector<1x512xf32> -> vector<1x512xf32>
    %49 = vector.broadcast %8 : vector<1x1xf32> to vector<1x512xf32>
    %50 = arith.addf %48, %49 : vector<1x512xf32>
    %cst_28 = arith.constant 5.000000e-01 : f32
    %51 = vector.broadcast %cst_28 : f32 to vector<1x512xf32>
    %52 = arith.mulf %51, %50 : vector<1x512xf32>
    %53 = math.tanh %52 : vector<1x512xf32>
    %cst_29 = arith.constant 1.000000e+00 : f32
    %54 = vector.broadcast %cst_29 : f32 to vector<1x512xf32>
    %55 = arith.addf %53, %54 : vector<1x512xf32>
    %cst_30 = arith.constant 5.000000e-01 : f32
    %56 = vector.broadcast %cst_30 : f32 to vector<1x512xf32>
    %57 = arith.mulf %56, %55 : vector<1x512xf32>
    %c0_31 = arith.constant 0 : index
    %c512_32 = arith.constant 512 : index
    %58 = vector.load %arg8[%c0_31, %c512_32] : memref<1x1024xf32, #tpu.memory_space<vmem>>, vector<1x512xf32>
    tpu.vector_store %arg8[%c0_31, %c512_32], %57 {strides = array<i32>} : memref<1x1024xf32, #tpu.memory_space<vmem>>, vector<1x512xf32>,
    return
  }
  func.func @transform_0(%arg0: i32) -> (i32, i32) {
    %c0_i32 = arith.constant 0 : i32
    %c0_i32_0 = arith.constant 0 : i32
    return %c0_i32, %arg0 : i32, i32
  }
  func.func @transform_1(%arg0: i32) -> (i32, i32) {
    %c0_i32 = arith.constant 0 : i32
    %c0_i32_0 = arith.constant 0 : i32
    %c0_i32_1 = arith.constant 0 : i32
    return %c0_i32, %c0_i32_0 : i32, i32
  }
  func.func @transform_2(%arg0: i32) -> (i32, i32) {
    %c0_i32 = arith.constant 0 : i32
    %c0_i32_0 = arith.constant 0 : i32
    %c0_i32_1 = arith.constant 0 : i32
    return %c0_i32, %c0_i32_0 : i32, i32
  }
  func.func @transform_3(%arg0: i32) -> (i32, i32) {
    %c0_i32 = arith.constant 0 : i32
    %c0_i32_0 = arith.constant 0 : i32
    %c0_i32_1 = arith.constant 0 : i32
    return %c0_i32, %c0_i32_0 : i32, i32
  }
  func.func @transform_4(%arg0: i32) -> (i32, i32) {
    %c0_i32 = arith.constant 0 : i32
    %c0_i32_0 = arith.constant 0 : i32
    %c0_i32_1 = arith.constant 0 : i32
    return %c0_i32, %c0_i32_0 : i32, i32
  }
  func.func @transform_5(%arg0: i32) -> (i32, i32) {
    %c0_i32 = arith.constant 0 : i32
    %c0_i32_0 = arith.constant 0 : i32
    %c0_i32_1 = arith.constant 0 : i32
    return %c0_i32, %c0_i32_0 : i32, i32
  }
  func.func @transform_6(%arg0: i32) -> (i32, i32) {
    %c0_i32 = arith.constant 0 : i32
    %c0_i32_0 = arith.constant 0 : i32
    %c0_i32_1 = arith.constant 0 : i32
    return %c0_i32, %c0_i32_0 : i32, i32
  }
  func.func @transform_7(%arg0: i32) -> (i32, i32) {
    %c0_i32 = arith.constant 0 : i32
    %c0_i32_0 = arith.constant 0 : i32
    return %c0_i32, %arg0 : i32, i32
  }
}

</mosaic_0001>

<bundles_post_ra>
// kernel: net_forward_t.1
= control target key start
LH: loop header
LB: loop body
LE: loop exit
PB: predicated region body
PF: predicated region fallthrough
CT: control target
= control target key end

     0   :  { %s1991_s0 = inlined_call_operand.hbm [shape: f32[14,2048], index: 0, kind: input, shape index: {}]   ;;  %s1992_s1 = inlined_call_operand.vmem [shape: f32[32,14], index: 1, kind: input, shape index: {}]   ;;  %s1993_s2 = inlined_call_operand.vmem [shape: f32[32,1], index: 2, kind: input, shape index: {}]   ;;  %s1994_s3 = inlined_call_operand.vmem [shape: f32[32,32], index: 3, kind: input, shape index: {}]   ;;  %s1995_s4 = inlined_call_operand.vmem [shape: f32[32,1], index: 4, kind: input, shape index: {}]   ;;  %s1996_s5 = inlined_call_operand.vmem [shape: f32[1,32], index: 5, kind: input, shape index: {}]   ;;  %s1997_s6 = inlined_call_operand.<no memory space> [shape: f32[1,1], index: 6, kind: input, shape index: {}]   ;;  %s1998_s7 = inlined_call_operand.hbm [shape: f32[1,2048], index: 7, kind: output, shape index: {}]  }
   0x1   :  { %v12_v0 = vstv %s1997_s6 }
   0x2   :  { %13 = vst [vmem:[#allocation2] sm:$0x1] %v12_v0 }
   0x3   :  { %14 = vsyncpa [#allocation4], 0 }
   0x4   :  { %16 = vsyncpa [#allocation4 + $0x1], 0 }
   0x5   :  { %17 = vsyncpa [#allocation5], 0 }
   0x6   :  { %19 = vsyncpa [#allocation5 + $0x1], 0  ;;  %s1562_s26 = smov 0   ;;  %s1564_s27 = smov 0  }
   0x7   :  { %s1566_s28 = smov 0   ;;  %s1568_s29 = smov 0  }
   0x8 LB: > { %s1583_s6 = sadd.s32 4294967295, %s1510_s29   ;;  %s1305_s30 = sadd.s32 4294967294, %s1510_s29   ;;  %s1510_s29 = sphi %s1568_s29, %s2014_s29   ;;  %s1506_s28 = sphi %s1566_s28, %s2013_s28   ;;  %s1502_s27 = sphi %s1564_s27, %s2012_s27   ;;  %s1498_s26 = sphi %s1562_s26, %s2011_s26  }
   0x9   : > { %s1587_s8 = sadd.s32 1, %s1510_s29   ;;  %s32_s9 = sadd.s32 1, %s1506_s28 }
   0xa   : > { %s29_s10 = ssub.s32 %s1510_s29, %s1587_s8  ;;  %p39_p0 = scmp.ne.s32.totalorder %s1506_s28, %s1502_s27 }
   0xb   : > { %p30_p1 = scmp.eq.s32.totalorder %s29_s10, 0  ;;  %p40_p2 = scmp.eq.s32.totalorder %s1510_s29, 0 }
   0xc   : > { %p45_p3 = scmp.ne.s32.totalorder %s1502_s27, %s1498_s26  ;;  %p46_p4 = scmp.eq.s32.totalorder %s1583_s6, 0 }
   0xd   : > { %s1599_s11 = scalar_select %p30_p1, %s1506_s28, %s32_s9  }
   0xe   : > { %p1601_p5 = por %p40_p2, %p39_p0  ;;  %p1605_p6 = por %p46_p4, %p45_p3 }
   0xf   : > { %p195_p7 = scmp.eq.s32.totalorder %s1583_s6, 1  ;;  %p201_p8 = scmp.eq.s32.totalorder %s1305_s30, 1 }
  0x10   : > { %p1357_p10 = scmp.lt.s32.totalorder %s1510_s29, 2  ;;  %s239_s16 = sand.u32 1, %s1506_s28  }
  0x11   : > { %p1612_p11 = por %p195_p7, %p39_p0  ;;  %p1616_p12 = por %p201_p8, %p45_p3 }
  0x12   : > { %s1343_s17 = sshll.u32 %s1510_s29, 10  ;;  %s1308_s18 = sshll.u32 %s239_s16, 7 }
  0x13   : > { %s2002_s14 = scalar_select %p1612_p11, 1, 0 }
  0x14   : > { %s2003_s15 = scalar_select %p1616_p12, 1, 0 }
  0x15   : > { %s1625_s21 = scalar_lea.hbm %s1991_s0, %s1343_s17  ;;  %s243_s22 = scalar_lea.vmem [#allocation3], %s1308_s18 }
  0x16   : > { %s250_s23 = sshll.u32 %s243_s22, 4  ;;  %p1629_p13 = pnand %p1357_p10, %p1601_p5  ;;  %s1633_s23 = int_to_ptr.vmem [resolvable:$true] %s250_s23 }
  0x17   : > { %s1636_s25 = scalar_lea.sflag [#allocation4], %s239_s16  ;;  %s1414_s30 = scalar_lea.hbm %s1625_s21, 2048 }
  0x18   : > { %p1415_p1 = scmp.ne.s32.totalorder %s1625_s21, %s1414_s30  ;;  %p1416_p2 = pneg %p1629_p13 }
  0x19   : > { %s1419_s12 = scalar_lea.hbm %s1991_s0, 4096  ;;  %p1420_p5 = scmp.lt.u32.totalorder %s1625_s21, %s1991_s0 }
  0x1a   : > { %p1417_p3 = pnand %p1416_p2, %p1415_p1  ;;  %p1421_p7 = scmp.lt.u32.totalorder %s1419_s12, %s1414_s30 }
  0x1b   : > { %p1423_p10 = scmp.lt.u32.totalorder %s1414_s30, %s1625_s21 }
  0x1c   : > { %p1418_p4 = pneg %p1417_p3  ;;  %p1422_p8 = por %p1421_p7, %p1420_p5 }
  0x1e   : > { %p1424_p9 = por %p1423_p10, %p1422_p8 }
  0x20   : > { %p1425_p0 = pnand %p1424_p9, %p1418_p4 }
  0x22   : > { %1428 = shalt.err (!%p1425_p0)
}
  0x23   : > { %s1429_s16 = scalar_lea.vmem %s1633_s23, 2048  ;;  %s1512_s19 = smov [#allocation3]  }
  0x24   : > { %p1430_p1 = scmp.ne.s32.totalorder %s1633_s23, %s1429_s16  ;;  %s1434_s20 = sshll.u32 %s1512_s19, 4  ;;  %s1435_s20 = int_to_ptr.vmem [resolvable:$false] %s1434_s20 }
  0x25   : > { %s1436_s22 = scalar_lea.vmem %s1435_s20, 4096  ;;  %p1437_p11 = scmp.lt.s32.totalorder %s1633_s23, %s1435_s20 }
  0x26   : > { %p1432_p3 = pnand %p1430_p1, %p1416_p2  ;;  %p1438_p5 = scmp.lt.s32.totalorder %s1436_s22, %s1429_s16 }
  0x28   : > { %p1433_p12 = pneg %p1432_p3  ;;  %p1439_p7 = por %p1438_p5, %p1437_p11 }
  0x2a   : > { %p1440_p8 = pnand %p1439_p7, %p1433_p12 }
  0x2c   : > { %1443 = shalt.err (!%p1440_p8)
}
  0x2d   : > { %s1513_s30 = smov 2048   ;;  %s1514_s9 = smov 1024  }
  0x2e   : > { %s1515_s10 = smov 64   ;;  %p258_p9 = scmp.lt.s32.totalorder %s1510_s29, 3 }
  0x2f   : > { %1352 = dma.hbm_to_vmem [thread:$0]  (!%p1629_p13), %s1625_s21, 2048, %s1633_s23, %s1636_s25, %s1513_s30, %s1514_s9, %s1515_s10  }
  0x30   : > { %p2005_p0 = scmp.ge.s32.totalorder %s1510_s29, 1 }
  0x32   : > { %p259_p2 = pnand %p2005_p0, %p258_p9 }
  0x33   : > { %s1668_s12 = sand.u32 (!%p259_p2), 1, %s1502_s27  }
  0x34   : > { %262 = sbr.rel (%p259_p2) target bundleno = 1266 (0x4f2), region = 48  ;;  %s1312_s17 = sshll.u32 (!%p259_p2), %s1668_s12, 7 }
  0x35   : > { %s265_s18 = scalar_lea.sflag (!%p259_p2), [#allocation4], %s1668_s12  ;;  %s1672_s16 = scalar_lea.vmem (!%p259_p2), [#allocation3], %s1312_s17 }
  0x3b   : > { %1489 = dma.done.wait (%p1605_p6), %s265_s18, 2048  }
  0x3c   : > { %1491 = vsyncadd (%p1605_p6), %s265_s18, 4294965248  ;;  %v1516_v1 = vmov 0   ;;  %v326_v2 = vld [vmem:[%s1672_s16 + $0x8] sm:$0xff]  ;;  %vm364_vm0 = vcmask 1046528   ;;  %v328_v4 = vld [vmem:[%s1672_s16 + $0x18] sm:$0xff]  ;;  %vm357_vm1 = vcmask 113664  }
  0x3d   : > { %409 = vmatprep.mubr.bf16.mxu0 %v1516_v1  ;;  %462 = vmatprep.mubr.bf16.mxu1 %v1516_v1  ;;  %v330_v3 = vld [vmem:[%s1672_s16 + $0x48] sm:$0x3f]  ;;  %v332_v6 = vld [vmem:[%s1672_s16 + $0x58] sm:$0x3f]  ;;  %v325_v7 = vld [vmem:[%s1672_s16] sm:$0xff]  ;;  %vm527_vm2 = vcmask 261120  }
  0x3e   : > { %1396 = vset.pattern.permute.xlu0 %v1516_v1  ;;  %1397 = vset.pattern.permute.xlu1 %v1516_v1  ;;  %v334_v5 = vpack.c.bf16 %v330_v3, %v326_v2  ;;  %v329_v8 = vld [vmem:[%s1672_s16 + $0x40] sm:$0x3f]  ;;  %v336_v9 = vpack.c.bf16 %v332_v6, %v328_v4  ;;  %v327_v11 = vld [vmem:[%s1672_s16 + $0x10] sm:$0xff]  ;;  %v303_v15 = vld [vmem:[%s1992_s1 + $0x8] sm:$0xff]  ;;  %s1344_s9 = sshll.u32 %s1583_s6, 7  ;;  %s1221_s21 = scalar_lea.sflag [#allocation5], %s1668_s12 }
  0x3f   : > { %v333_v10 = vpack.c.bf16 %v329_v8, %v325_v7  ;;  %v331_v12 = vld [vmem:[%s1672_s16 + $0x50] sm:$0x3f]  ;;  %v302_v13 = vld [vmem:[%s1992_s1] sm:$0xff]  ;;  %v317_v21 = vld [vmem:[%s1993_s2 + $0x8] sm:$0xff]  ;;  %s1944_s13 = scalar_lea.hbm %s1998_s7, %s1344_s9  ;;  %p2008_p11 = scmp.ne.s32.totalorder %s2002_s14, 0 }
  0x40   : > { %1314 = vmatprep.subr.msk.bf16.mxu0 %vm364_vm0, %v334_v5  ;;  %v335_v14 = vpack.c.bf16 %v331_v12, %v327_v11  ;;  %1317 = vmatprep.subr.msk.bf16.mxu1 %vm364_vm0, %v336_v9  ;;  %v1699_v17 = vpack.c.bf16 %v303_v15, %v302_v13  ;;  %v316_v18 = vld [vmem:[%s1993_s2] sm:$0xff]  ;;  %v318_v20 = vld [vmem:[%s1993_s2 + $0x10] sm:$0xff]  ;;  %v319_v22 = vld [vmem:[%s1993_s2 + $0x18] sm:$0xff]  ;;  %s1518_s6 = smov [#allocation6]  }
  0x41   : > { %v366_v16 = vsel %vm364_vm0, %v333_v10, 0  ;;  %339 = vperm.xlu0 %1396, %v316_v18   ;;  %349 = vperm.xlu1 %1397, %v318_v20   ;;  %v304_v23 = vld [vmem:[%s1992_s1 + $0x10] sm:$0xff]  ;;  %v305_v24 = vld [vmem:[%s1992_s1 + $0x18] sm:$0xff]  ;;  %v320_v25 = vld [vmem:[%s1995_s4] sm:$0xff]  ;;  %s1448_s24 = sshll.u32 %s1518_s6, 4  ;;  %s1449_s24 = int_to_ptr.vmem [resolvable:$false] %s1448_s24 }
  0x42   : > { %378 = vmatpush1.bf16.msra.mxu0 %v366_v16  ;;  %v372_v19 = vsel %vm364_vm0, %v335_v14, 0  ;;  %v1729_v26 = vpack.c.bf16 %v305_v24, %v304_v23  ;;  %v321_v27 = vld [vmem:[%s1995_s4 + $0x8] sm:$0xff]  ;;  %v322_v28 = vld [vmem:[%s1995_s4 + $0x10] sm:$0xff]  ;;  %v323_v29 = vld [vmem:[%s1995_s4 + $0x18] sm:$0xff]  ;;  %s1450_s25 = scalar_lea.vmem %s1449_s24, 256 }
  0x43   : > { %431 = vmatpush1.bf16.msra.mxu1 %v372_v19  ;;  %v324_v30 = vld [vmem:[#allocation2] sm:$0x1] }
  0x45   : > { %1315 = vmatmul.mubr.msk.bf16.vlgmr.msra.gmra.mrb[0].mxu0 %vm357_vm1, %v1699_v17  ;;  %344 = vperm.xlu0 %1396, %v317_v21  }
  0x46   : > { %1318 = vmatmul.mubr.msk.bf16.vlgmr.msra.gmra.mrb[0].mxu1 %vm357_vm1, %v1699_v17  ;;  %419 = vmatprep.mubr.bf16.mxu0 %v1516_v1 }
  0x47   : > { %472 = vmatprep.mubr.bf16.mxu1 %v1516_v1  ;;  %354 = vperm.xlu1 %1397, %v319_v22  }
  0x49   : > { %509 = vperm.xlu0 %1396, %v320_v25  }
  0x4b   : > { %514 = vperm.xlu1 %1397, %v321_v27   ;;  %v308_v27 = vld [vmem:[%s1994_s3] sm:$0xff] }
  0x4d   : > { %1316 = vmatmul.mubr.msk.bf16.gmra.mrb[4].mxu0 %vm357_vm1, %v1729_v26  ;;  %519 = vperm.xlu0 %1396, %v322_v28   ;;  %v309_v28 = vld [vmem:[%s1994_s3 + $0x8] sm:$0xff] }
  0x4e   : > { %1319 = vmatmul.mubr.msk.bf16.gmra.mrb[4].mxu1 %vm357_vm1, %v1729_v26  ;;  %566 = vmatprep.mubr.bf16.mxu0 %v1516_v1 }
  0x4f   : > { %619 = vmatprep.mubr.bf16.mxu1 %v1516_v1  ;;  %524 = vperm.xlu1 %1397, %v323_v29  }
  0x51   : > { %666 = vperm.xlu0 %1396, %v324_v30  }
  0xc0   : > { %v1746_v31 = vpop.permute.xlu0 %339  ;;  %v1748_v32 = vpop.permute.xlu1 %349 }
  0xc4   : > { %v1750_v33 = vpop.permute.xlu0 %344 }
  0xc6   : > { %v1760_v59 = vpop.permute.xlu1 %354 }
 0x118   : > { %v411_v34 = vpop.f32.mrb[0].mxu0 }
 0x119   : > { %v412_v35 = vadd.f32 %v411_v34, %v1746_v31  ;;  %v464_v36 = vpop.f32.mrb[0].mxu1  ;;  %v413_v37 = vpop.f32.mrb[1].mxu0 }
 0x11a   : > { %v465_v38 = vadd.f32 %v464_v36, %v1746_v31  ;;  %v414_v39 = vadd.f32 %v413_v37, %v1746_v31  ;;  %v466_v40 = vpop.f32.mrb[1].mxu1  ;;  %v415_v41 = vpop.f32.mrb[2].mxu0  ;;  %v310_v36 = vld [vmem:[%s1994_s3 + $0x10] sm:$0xff]  ;;  %v311_v37 = vld [vmem:[%s1994_s3 + $0x18] sm:$0xff] }
 0x11b   : > { %v467_v42 = vadd.f32 %v466_v40, %v1746_v31  ;;  %v416_v43 = vadd.f32 %v415_v41, %v1750_v33  ;;  %v468_v44 = vpop.f32.mrb[2].mxu1  ;;  %v417_v45 = vpop.f32.mrb[3].mxu0  ;;  %v483_v49 = vmax.f32 %v412_v35, 0.0  ;;  %v1776_v35 = vpack.c.bf16 %v309_v28, %v308_v27  ;;  %v813_v27 = vld [vmem:[%s1672_s16 + $0x68] sm:$0x3f]  ;;  %v811_v28 = vld [vmem:[%s1672_s16 + $0x38] sm:$0xff] }
 0x11c   : > { %v469_v46 = vadd.f32 %v468_v44, %v1750_v33  ;;  %v418_v47 = vadd.f32 %v417_v45, %v1750_v33  ;;  %v470_v48 = vpop.f32.mrb[3].mxu1  ;;  %v485_v52 = vmax.f32 %v465_v38, 0.0  ;;  %v484_v53 = vmax.f32 %v414_v39, 0.0  ;;  %v1798_v39 = vpop.permute.xlu0 %509 }
 0x11d   : > { %v487_v50 = vmax.f32 %v416_v43, 0.0  ;;  %v471_v51 = vadd.f32 %v470_v48, %v1750_v33  ;;  %v486_v56 = vmax.f32 %v467_v42, 0.0  ;;  %v1790_v38 = vpack.c.bf16 %v311_v37, %v310_v36  ;;  %v1800_v40 = vpop.permute.xlu1 %514  ;;  %v808_v37 = vld [vmem:[%s1672_s16 + $0x20] sm:$0xff] }
 0x11e   : > { %v489_v54 = vmax.f32 %v469_v46, 0.0  ;;  %v488_v55 = vmax.f32 %v418_v47, 0.0 }
 0x11f   : > { %v499_v57 = vpack.c.bf16 %v487_v50, %v483_v49  ;;  %v490_v58 = vmax.f32 %v471_v51, 0.0 }
 0x120   : > { %v501_v60 = vpack.c.bf16 %v489_v54, %v485_v52  ;;  %v500_v61 = vpack.c.bf16 %v488_v55, %v484_v53  ;;  %v421_v62 = vpop.f32.mrb[4].mxu0 }
 0x121   : > { %v502_v63 = vpack.c.bf16 %v490_v58, %v486_v56  ;;  %v422_v0 = vadd.f32 %v421_v62, %v1748_v32  ;;  %v474_v2 = vpop.f32.mrb[4].mxu1  ;;  %v423_v3 = vpop.f32.mrb[5].mxu0 }
 0x122   : > { %v475_v4 = vadd.f32 %v474_v2, %v1748_v32  ;;  %v424_v5 = vadd.f32 %v423_v3, %v1748_v32  ;;  %v476_v6 = vpop.f32.mrb[5].mxu1  ;;  %v425_v7 = vpop.f32.mrb[6].mxu0  ;;  %534 = vmatprep.subr.bf16.mxu0 %v500_v61 }
 0x123   : > { %v477_v8 = vadd.f32 %v476_v6, %v1748_v32  ;;  %v426_v9 = vadd.f32 %v425_v7, %v1760_v59  ;;  %v478_v10 = vpop.f32.mrb[6].mxu1  ;;  %587 = vmatprep.subr.bf16.mxu1 %v502_v63  ;;  %v427_v11 = vpop.f32.mrb[7].mxu0  ;;  %535 = vmatpush1.bf16.msra.mxu0 %v499_v57  ;;  %v491_v15 = vmax.f32 %v422_v0, 0.0 }
 0x124   : > { %v479_v12 = vadd.f32 %v478_v10, %v1760_v59  ;;  %v428_v13 = vadd.f32 %v427_v11, %v1760_v59  ;;  %v480_v14 = vpop.f32.mrb[7].mxu1  ;;  %588 = vmatpush1.bf16.msra.mxu1 %v501_v60  ;;  %v493_v19 = vmax.f32 %v475_v4, 0.0  ;;  %v492_v20 = vmax.f32 %v424_v5, 0.0  ;;  %v1810_v0 = vpop.permute.xlu0 %519 }
 0x125   : > { %v495_v16 = vmax.f32 %v426_v9, 0.0  ;;  %v481_v18 = vadd.f32 %v480_v14, %v1760_v59  ;;  %v494_v23 = vmax.f32 %v477_v8, 0.0  ;;  %v1812_v5 = vpop.permute.xlu1 %524 }
 0x126   : > { %v497_v21 = vmax.f32 %v479_v12, 0.0  ;;  %v496_v22 = vmax.f32 %v428_v13, 0.0 }
 0x127   : > { %v503_v24 = vpack.c.bf16 %v495_v16, %v491_v15  ;;  %v498_v25 = vmax.f32 %v481_v18, 0.0 }
 0x128   : > { %v505_v29 = vpack.c.bf16 %v497_v21, %v493_v19  ;;  %v504_v30 = vpack.c.bf16 %v496_v22, %v492_v20  ;;  %v809_v22 = vld [vmem:[%s1672_s16 + $0x28] sm:$0xff] }
 0x129   : > { %v506_v34 = vpack.c.bf16 %v498_v25, %v494_v23 }
 0x12a   : > { %536 = vmatprep.subr.bf16.mxu0 %v504_v30 }
 0x12b   : > { %589 = vmatprep.subr.bf16.mxu1 %v506_v34  ;;  %537 = vmatpush1.bf16.msra.mxu0 %v503_v24 }
 0x12c   : > { %590 = vmatpush1.bf16.msra.mxu1 %v505_v29  ;;  %v815_v29 = vld [vmem:[%s1672_s16 + $0x78] sm:$0x3f] }
 0x12e   : > { %1320 = vmatmul.mubr.msk.bf16.vlgmr.msra.gmra.mrb[8].mxu0 %vm527_vm2, %v1776_v35 }
 0x12f   : > { %1322 = vmatmul.mubr.msk.bf16.vlgmr.msra.gmra.mrb[8].mxu1 %vm527_vm2, %v1776_v35  ;;  %576 = vmatprep.mubr.bf16.mxu0 %v1516_v1 }
 0x130   : > { %629 = vmatprep.mubr.bf16.mxu1 %v1516_v1 }
 0x136   : > { %1321 = vmatmul.mubr.msk.bf16.gmra.mrb[12].mxu0 %vm527_vm2, %v1790_v38 }
 0x137   : > { %1323 = vmatmul.mubr.msk.bf16.gmra.mrb[12].mxu1 %vm527_vm2, %v1790_v38  ;;  %708 = vmatprep.mubr.bf16.mxu0 %v1516_v1 }
 0x138   : > { %749 = vmatprep.mubr.bf16.mxu1 %v1516_v1 }
 0x201   : > { %v568_v41 = vpop.f32.mrb[8].mxu0 }
 0x202   : > { %v569_v42 = vadd.f32 %v568_v41, %v1798_v39  ;;  %v621_v43 = vpop.f32.mrb[8].mxu1  ;;  %v570_v44 = vpop.f32.mrb[9].mxu0  ;;  %v812_v41 = vld [vmem:[%s1672_s16 + $0x60] sm:$0x3f] }
 0x203   : > { %v622_v45 = vadd.f32 %v621_v43, %v1798_v39  ;;  %v571_v46 = vadd.f32 %v570_v44, %v1798_v39  ;;  %v623_v47 = vpop.f32.mrb[9].mxu1  ;;  %v572_v48 = vpop.f32.mrb[10].mxu0 }
 0x204   : > { %v624_v49 = vadd.f32 %v623_v47, %v1798_v39  ;;  %v573_v50 = vadd.f32 %v572_v48, %v1800_v40  ;;  %v625_v51 = vpop.f32.mrb[10].mxu1  ;;  %v574_v52 = vpop.f32.mrb[11].mxu0  ;;  %v640_v56 = vmax.f32 %v569_v42, 0.0  ;;  %v810_v42 = vld [vmem:[%s1672_s16 + $0x30] sm:$0xff] }
 0x205   : > { %v626_v53 = vadd.f32 %v625_v51, %v1800_v40  ;;  %v575_v54 = vadd.f32 %v574_v52, %v1800_v40  ;;  %v627_v55 = vpop.f32.mrb[11].mxu1  ;;  %v642_v60 = vmax.f32 %v622_v45, 0.0  ;;  %v641_v61 = vmax.f32 %v571_v46, 0.0  ;;  %v814_v47 = vld [vmem:[%s1672_s16 + $0x70] sm:$0x3f]  ;;  %s1313_s16 = sshll.u32 %s1668_s12, 3 }
 0x206   : > { %v644_v57 = vmax.f32 %v573_v50, 0.0  ;;  %v628_v58 = vadd.f32 %v627_v55, %v1800_v40  ;;  %v643_v2 = vmax.f32 %v624_v49, 0.0  ;;  %v314_v51 = vld [vmem:[%s1996_s5] sm:$0x1]  ;;  %v816_v55 = vpack.c.bf16 %v812_v41, %v808_v37  ;;  %s1897_s30 = scalar_lea.vmem [#allocation6], %s1313_s16 }
 0x207   : > { %v646_v62 = vmax.f32 %v626_v53, 0.0  ;;  %v645_v63 = vmax.f32 %v575_v54, 0.0  ;;  %v817_v54 = vpack.c.bf16 %v813_v27, %v809_v22  ;;  %s1235_s10 = sshll.u32 %s1897_s30, 4  ;;  %s1946_s10 = int_to_ptr.vmem [resolvable:$true] %s1235_s10 }
 0x208   : > { %v656_v3 = vpack.c.bf16 %v644_v57, %v640_v56  ;;  %v647_v4 = vmax.f32 %v628_v58, 0.0  ;;  %v819_v57 = vpack.c.bf16 %v815_v29, %v811_v28  ;;  %v818_v58 = vpack.c.bf16 %v814_v47, %v810_v42  ;;  %s1444_s23 = scalar_lea.vmem %s1946_s10, 128  ;;  %p1451_p4 = scmp.lt.s32.totalorder %s1946_s10, %s1449_s24 }
 0x209   : > { %v658_v6 = vpack.c.bf16 %v646_v62, %v642_v60  ;;  %v657_v7 = vpack.c.bf16 %v645_v63, %v641_v61  ;;  %v578_v8 = vpop.f32.mrb[12].mxu0  ;;  %v1833_v60 = vpack.c.bf16 %v314_v51, %v314_v51  ;;  %v821_v61 = vsel %vm364_vm0, %v816_v55, 0  ;;  %p1445_p6 = scmp.ne.s32.totalorder %s1946_s10, %s1444_s23  ;;  %p1452_p10 = scmp.lt.s32.totalorder %s1450_s25, %s1444_s23 }
 0x20a   : > { %v659_v9 = vpack.c.bf16 %v647_v4, %v643_v2  ;;  %v579_v10 = vadd.f32 %v578_v8, %v1810_v0  ;;  %v631_v11 = vpop.f32.mrb[12].mxu1  ;;  %v580_v12 = vpop.f32.mrb[13].mxu0  ;;  %v827_v62 = vsel %vm364_vm0, %v818_v58, 0  ;;  %v669_v63 = vlaneseq }
 0x20b   : > { %v632_v13 = vadd.f32 %v631_v11, %v1810_v0  ;;  %v581_v14 = vadd.f32 %v580_v12, %v1810_v0  ;;  %v633_v15 = vpop.f32.mrb[13].mxu1  ;;  %v582_v16 = vpop.f32.mrb[14].mxu0  ;;  %676 = vmatprep.subr.bf16.mxu0 %v657_v7  ;;  %v1517_v42 = vmov 1966171168   ;;  %p1446_p12 = pnand %p1445_p6, %p2008_p11  ;;  %p1453_p1 = por %p1452_p10, %p1451_p4 }
 0x20c   : > { %v634_v18 = vadd.f32 %v633_v15, %v1810_v0  ;;  %v583_v19 = vadd.f32 %v582_v16, %v1812_v5  ;;  %v635_v20 = vpop.f32.mrb[14].mxu1  ;;  %717 = vmatprep.subr.bf16.mxu1 %v659_v9  ;;  %v584_v21 = vpop.f32.mrb[15].mxu0  ;;  %677 = vmatpush1.bf16.msra.mxu0 %v656_v3  ;;  %v648_v30 = vmax.f32 %v579_v10, 0.0  ;;  %v1858_v2 = vshrl.u32 %v669_v63, 7 }
 0x20d   : > { %v636_v23 = vadd.f32 %v635_v20, %v1812_v5  ;;  %v585_v24 = vadd.f32 %v584_v21, %v1812_v5  ;;  %v637_v25 = vpop.f32.mrb[15].mxu1  ;;  %718 = vmatpush1.bf16.msra.mxu1 %v658_v6  ;;  %v650_v43 = vmax.f32 %v632_v13, 0.0  ;;  %v649_v44 = vmax.f32 %v581_v14, 0.0  ;;  %v667_v3 = vpop.permute.xlu0 %666  ;;  %p1447_p13 = pneg %p1446_p12 }
 0x20e   : > { %v652_v34 = vmax.f32 %v583_v19, 0.0  ;;  %v638_v36 = vadd.f32 %v637_v25, %v1812_v5  ;;  %v651_v48 = vmax.f32 %v634_v18, 0.0  ;;  %vm1890_vm3 = vcmp.lt.s32.totalorder %v669_v63, 512 }
 0x20f   : > { %v654_v45 = vmax.f32 %v636_v23, 0.0  ;;  %v653_v46 = vmax.f32 %v585_v24, 0.0  ;;  %p1454_p3 = pnand %p1453_p1, %p1447_p13 }
 0x210   : > { %v660_v49 = vpack.c.bf16 %v652_v34, %v648_v30  ;;  %v655_v50 = vmax.f32 %v638_v36, 0.0 }
 0x211   : > { %v662_v52 = vpack.c.bf16 %v654_v45, %v650_v43  ;;  %v661_v53 = vpack.c.bf16 %v653_v46, %v649_v44  ;;  %v781_v43 = vunpack.c.l.s4 %v1517_v42 }
 0x212   : > { %v663_v56 = vpack.c.bf16 %v655_v50, %v651_v48 }
 0x213   : > { %678 = vmatprep.subr.bf16.mxu0 %v661_v53  ;;  %v782_v58 = vunpack.c.0.s8 %v781_v43 }
 0x214   : > { %719 = vmatprep.subr.bf16.mxu1 %v663_v56  ;;  %679 = vmatpush1.bf16.msra.mxu0 %v660_v49 }
 0x215   : > { %720 = vmatpush1.bf16.msra.mxu1 %v662_v52  ;;  %1326 = vmatprep.subr.msk.bf16.mxu0 %vm364_vm0, %v817_v54 }
 0x216   : > { %1329 = vmatprep.subr.msk.bf16.mxu1 %vm364_vm0, %v819_v57 }
 0x217   : > { %1324 = vmatmul.mubr.msk.bf16.vlgmr.msra.gmra.mrb[16].mxu0 %vm527_vm2, %v1833_v60 }
 0x218   : > { %1325 = vmatmul.mubr.msk.bf16.vlgmr.msra.gmra.mrb[16].mxu1 %vm527_vm2, %v1833_v60  ;;  %833 = vmatpush1.bf16.msra.mxu0 %v821_v61 }
 0x219   : > { %886 = vmatpush1.bf16.msra.mxu1 %v827_v62  ;;  %864 = vmatprep.mubr.bf16.mxu0 %v1516_v1 }
 0x21a   : > { %917 = vmatprep.mubr.bf16.mxu1 %v1516_v1 }
 0x21f   : > { %1327 = vmatmul.mubr.msk.bf16.vlgmr.msra.gmra.mrb[20].mxu0 %vm357_vm1, %v1699_v17 }
 0x220   : > { %1330 = vmatmul.mubr.msk.bf16.vlgmr.msra.gmra.mrb[20].mxu1 %vm357_vm1, %v1699_v17  ;;  %874 = vmatprep.mubr.bf16.mxu0 %v1516_v1  ;;  %v671_v17 = vsub.s32 0, %v1858_v2 }
 0x221   : > { %927 = vmatprep.mubr.bf16.mxu1 %v1516_v1 }
 0x222   : > { %v1861_v4 = vrot.slane %v667_v3, %v671_v17 }
 0x227   : > { %1328 = vmatmul.mubr.msk.bf16.gmra.mrb[24].mxu0 %vm357_vm1, %v1729_v26 }
 0x228   : > { %1331 = vmatmul.mubr.msk.bf16.gmra.mrb[24].mxu1 %vm357_vm1, %v1729_v26  ;;  %994 = vmatprep.mubr.bf16.mxu0 %v1516_v1 }
 0x229   : > { %1047 = vmatprep.mubr.bf16.mxu1 %v1516_v1 }
 0x2ea   : > { %v710_v6 = vpop.f32.mrb[16].mxu0 }
 0x2eb   : > { %v711_v7 = vadd.f32 %v710_v6, %v1861_v4  ;;  %v751_v8 = vpop.f32.mrb[16].mxu1  ;;  %v712_v9 = vpop.f32.mrb[17].mxu0 }
 0x2ec   : > { %v752_v26 = vadd.f32 %v751_v8, %v1861_v4  ;;  %v713_v10 = vadd.f32 %v712_v9, %v1861_v4  ;;  %v753_v11 = vpop.f32.mrb[17].mxu1  ;;  %v714_v12 = vpop.f32.mrb[18].mxu0 }
 0x2ed   : > { %v758_v13 = vmul.f32 0.5, %v711_v7  ;;  %v754_v14 = vadd.f32 %v753_v11, %v1861_v4  ;;  %v755_v15 = vpop.f32.mrb[18].mxu1  ;;  %v715_v16 = vpop.f32.mrb[19].mxu0 }
 0x2ee   : > { %v760_v18 = vmul.f32 0.5, %v752_v26  ;;  %v759_v19 = vmul.f32 0.5, %v713_v10  ;;  %v756_v20 = vpop.f32.mrb[19].mxu1 }
 0x2ef   : > { %1398 = vtanh.f32 %v758_v13  ;;  %v761_v21 = vmul.f32 0.5, %v754_v14 }
 0x2f0   : > { %1400 = vtanh.f32 %v760_v18 }
 0x2f1   : > { %1402 = vtanh.f32 %v759_v19 }
 0x2f2   : > { %1404 = vtanh.f32 %v761_v21  ;;  %v866_v22 = vpop.f32.mrb[20].mxu0 }
 0x2f3   : > { %v867_v23 = vadd.f32 %v866_v22, %v1746_v31  ;;  %v919_v24 = vpop.f32.mrb[20].mxu1  ;;  %v868_v25 = vpop.f32.mrb[21].mxu0  ;;  %v1879_v22 = vsub.s32 %v782_v58, %v1858_v2 }
 0x2f4   : > { %v920_v27 = vadd.f32 %v919_v24, %v1746_v31  ;;  %v869_v28 = vadd.f32 %v868_v25, %v1746_v31  ;;  %v921_v29 = vpop.f32.mrb[21].mxu1  ;;  %v870_v30 = vpop.f32.mrb[22].mxu0 }
 0x2f5   : > { %v922_v34 = vadd.f32 %v921_v29, %v1746_v31  ;;  %v871_v36 = vadd.f32 %v870_v30, %v1750_v33  ;;  %v923_v37 = vpop.f32.mrb[22].mxu1  ;;  %v872_v41 = vpop.f32.mrb[23].mxu0  ;;  %v938_v47 = vmax.f32 %v867_v23, 0.0 }
 0x2f6   : > { %v924_v44 = vadd.f32 %v923_v37, %v1750_v33  ;;  %v873_v45 = vadd.f32 %v872_v41, %v1750_v33  ;;  %v925_v46 = vpop.f32.mrb[23].mxu1  ;;  %v940_v50 = vmax.f32 %v920_v27, 0.0  ;;  %v939_v51 = vmax.f32 %v869_v28, 0.0 }
 0x2f7   : > { %v942_v48 = vmax.f32 %v871_v36, 0.0  ;;  %v926_v49 = vadd.f32 %v925_v46, %v1750_v33  ;;  %v941_v54 = vmax.f32 %v922_v34, 0.0 }
 0x2f8   : > { %v944_v52 = vmax.f32 %v924_v44, 0.0  ;;  %v943_v53 = vmax.f32 %v873_v45, 0.0 }
 0x2f9   : > { %v1399_v31 = vpop.eup %1398  ;;  %v954_v55 = vpack.c.bf16 %v942_v48, %v938_v47  ;;  %v945_v56 = vmax.f32 %v926_v49, 0.0 }
 0x2fa   : > { %v1401_v57 = vpop.eup %1400  ;;  %v766_v61 = vadd.f32 1.0, %v1399_v31  ;;  %v956_v62 = vpack.c.bf16 %v944_v52, %v940_v50  ;;  %v955_v17 = vpack.c.bf16 %v943_v53, %v939_v51  ;;  %v876_v3 = vpop.f32.mrb[24].mxu0 }
 0x2fb   : > { %v1403_v6 = vpop.eup %1402  ;;  %v768_v7 = vadd.f32 1.0, %v1401_v57  ;;  %v957_v8 = vpack.c.bf16 %v945_v56, %v941_v54  ;;  %v877_v9 = vadd.f32 %v876_v3, %v1748_v32  ;;  %v929_v33 = vpop.f32.mrb[24].mxu1 }
 0x2fc   : > { %v878_v26 = vpop.f32.mrb[25].mxu0  ;;  %v1405_v10 = vpop.eup %1404  ;;  %v770_v11 = vmul.f32 0.5, %v766_v61  ;;  %v767_v12 = vadd.f32 1.0, %v1403_v6  ;;  %v930_v13 = vadd.f32 %v929_v33, %v1748_v32  ;;  %962 = vmatprep.subr.bf16.mxu0 %v955_v17 }
 0x2fd   : > { %v931_v14 = vpop.f32.mrb[25].mxu1  ;;  %v880_v15 = vpop.f32.mrb[26].mxu0  ;;  %v772_v16 = vmul.f32 0.5, %v768_v7  ;;  %v769_v18 = vadd.f32 1.0, %v1405_v10  ;;  %v879_v19 = vadd.f32 %v878_v26, %v1748_v32  ;;  %1015 = vmatprep.subr.bf16.mxu1 %v957_v8  ;;  %963 = vmatpush1.bf16.msra.mxu0 %v954_v55  ;;  %v946_v29 = vmax.f32 %v877_v9, 0.0 }
 0x2fe   : > { %v933_v20 = vpop.f32.mrb[26].mxu1  ;;  %v882_v21 = vpop.f32.mrb[27].mxu0  ;;  %v771_v23 = vmul.f32 0.5, %v767_v12  ;;  %v932_v24 = vadd.f32 %v931_v14, %v1748_v32  ;;  %v881_v25 = vadd.f32 %v880_v15, %v1760_v59  ;;  %1016 = vmatpush1.bf16.msra.mxu1 %v956_v62  ;;  %v948_v37 = vmax.f32 %v930_v13, 0.0 }
 0x2ff   : > { %v935_v27 = vpop.f32.mrb[27].mxu1  ;;  %v773_v28 = vmul.f32 0.5, %v769_v18  ;;  %v934_v30 = vadd.f32 %v933_v20, %v1760_v59  ;;  %v883_v34 = vadd.f32 %v882_v21, %v1760_v59  ;;  %v947_v43 = vmax.f32 %v879_v19, 0.0 }
 0x300   : > { %v778_v36 = vcombine.low %v770_v11, %v771_v23  ;;  %v950_v41 = vmax.f32 %v881_v25, 0.0  ;;  %v936_v2 = vadd.f32 %v935_v27, %v1760_v59  ;;  %v949_v46 = vmax.f32 %v932_v24, 0.0 }
 0x301   : > { %v779_v42 = vcombine.low %v772_v16, %v773_v28  ;;  %v952_v44 = vmax.f32 %v934_v30, 0.0  ;;  %v951_v32 = vmax.f32 %v883_v34, 0.0 }
 0x302   : > { %v786_v45 = vrot.slane %v778_v36, %v1879_v22  ;;  %v958_v47 = vpack.c.bf16 %v950_v41, %v946_v29  ;;  %v953_v48 = vmax.f32 %v936_v2, 0.0 }
 0x303   : > { %v793_v49 = vrot.slane %v779_v42, %v1879_v22  ;;  %v960_v50 = vpack.c.bf16 %v952_v44, %v948_v37  ;;  %v959_v51 = vpack.c.bf16 %v951_v32, %v947_v43 }
 0x304   : > { %v961_v52 = vpack.c.bf16 %v953_v48, %v949_v46 }
 0x305   : > { %v794_v53 = vcombine.low %v786_v45, %v793_v49  ;;  %964 = vmatprep.subr.bf16.mxu0 %v959_v51 }
 0x306   : > { %1017 = vmatprep.subr.bf16.mxu1 %v961_v52  ;;  %965 = vmatpush1.bf16.msra.mxu0 %v958_v47 }
 0x307   : > { %v801_v31 = vrot.slane %v794_v53, %v1879_v22  ;;  %1018 = vmatpush1.bf16.msra.mxu1 %v960_v50 }
 0x309   : > { %1332 = vmatmul.mubr.msk.bf16.vlgmr.msra.gmra.mrb[28].mxu0 %vm527_vm2, %v1776_v35  ;;  %807 = vst.msk [vmem:[%s1897_s30] sm:$0xf] %vm1890_vm3, %v801_v31 }
 0x30a   : > { %1334 = vmatmul.mubr.msk.bf16.vlgmr.msra.gmra.mrb[28].mxu1 %vm527_vm2, %v1776_v35  ;;  %1004 = vmatprep.mubr.bf16.mxu0 %v1516_v1 }
 0x30b   : > { %1057 = vmatprep.mubr.bf16.mxu1 %v1516_v1 }
 0x311   : > { %1333 = vmatmul.mubr.msk.bf16.gmra.mrb[32].mxu0 %vm527_vm2, %v1790_v38 }
 0x312   : > { %1335 = vmatmul.mubr.msk.bf16.gmra.mrb[32].mxu1 %vm527_vm2, %v1790_v38  ;;  %1124 = vmatprep.mubr.bf16.mxu0 %v1516_v1 }
 0x313   : > { %1165 = vmatprep.mubr.bf16.mxu1 %v1516_v1 }
 0x3dc   : > { %v996_v63 = vpop.f32.mrb[28].mxu0 }
 0x3dd   : > { %v997_v54 = vadd.f32 %v996_v63, %v1798_v39  ;;  %v1049_v55 = vpop.f32.mrb[28].mxu1  ;;  %v998_v56 = vpop.f32.mrb[29].mxu0 }
 0x3de   : > { %v1050_v35 = vadd.f32 %v1049_v55, %v1798_v39  ;;  %v999_v57 = vadd.f32 %v998_v56, %v1798_v39  ;;  %v1051_v58 = vpop.f32.mrb[29].mxu1  ;;  %v1000_v61 = vpop.f32.mrb[30].mxu0 }
 0x3df   : > { %v1052_v62 = vadd.f32 %v1051_v58, %v1798_v39  ;;  %v1001_v17 = vadd.f32 %v1000_v61, %v1800_v40  ;;  %v1053_v38 = vpop.f32.mrb[30].mxu1  ;;  %v1002_v3 = vpop.f32.mrb[31].mxu0  ;;  %v1068_v8 = vmax.f32 %v997_v54, 0.0 }
 0x3e0   : > { %v1054_v6 = vadd.f32 %v1053_v38, %v1800_v40  ;;  %v1003_v1 = vadd.f32 %v1002_v3, %v1800_v40  ;;  %v1055_v7 = vpop.f32.mrb[31].mxu1  ;;  %v1070_v26 = vmax.f32 %v1050_v35, 0.0  ;;  %v1069_v10 = vmax.f32 %v999_v57, 0.0 }
 0x3e1   : > { %v1072_v9 = vmax.f32 %v1001_v17, 0.0  ;;  %v1056_v33 = vadd.f32 %v1055_v7, %v1800_v40  ;;  %v1071_v13 = vmax.f32 %v1052_v62, 0.0 }
 0x3e2   : > { %v1074_v11 = vmax.f32 %v1054_v6, 0.0  ;;  %v1073_v12 = vmax.f32 %v1003_v1, 0.0 }
 0x3e3   : > { %v1084_v14 = vpack.c.bf16 %v1072_v9, %v1068_v8  ;;  %v1075_v39 = vmax.f32 %v1056_v33, 0.0 }
 0x3e4   : > { %v1086_v15 = vpack.c.bf16 %v1074_v11, %v1070_v26  ;;  %v1085_v16 = vpack.c.bf16 %v1073_v12, %v1069_v10  ;;  %v1006_v18 = vpop.f32.mrb[32].mxu0 }
 0x3e5   : > { %v1087_v19 = vpack.c.bf16 %v1075_v39, %v1071_v13  ;;  %v1007_v20 = vadd.f32 %v1006_v18, %v1810_v0  ;;  %v1059_v21 = vpop.f32.mrb[32].mxu1  ;;  %v1008_v23 = vpop.f32.mrb[33].mxu0 }
 0x3e6   : > { %v1060_v24 = vadd.f32 %v1059_v21, %v1810_v0  ;;  %v1009_v25 = vadd.f32 %v1008_v23, %v1810_v0  ;;  %v1061_v40 = vpop.f32.mrb[33].mxu1  ;;  %v1010_v27 = vpop.f32.mrb[34].mxu0  ;;  %1092 = vmatprep.subr.bf16.mxu0 %v1085_v16 }
 0x3e7   : > { %v1062_v28 = vadd.f32 %v1061_v40, %v1810_v0  ;;  %v1011_v29 = vadd.f32 %v1010_v27, %v1812_v5  ;;  %v1063_v30 = vpop.f32.mrb[34].mxu1  ;;  %1133 = vmatprep.subr.bf16.mxu1 %v1087_v19  ;;  %v1012_v34 = vpop.f32.mrb[35].mxu0  ;;  %1093 = vmatpush1.bf16.msra.mxu0 %v1084_v14  ;;  %v1076_v2 = vmax.f32 %v1007_v20, 0.0 }
 0x3e8   : > { %v1064_v36 = vadd.f32 %v1063_v30, %v1812_v5  ;;  %v1013_v37 = vadd.f32 %v1012_v34, %v1812_v5  ;;  %v1065_v41 = vpop.f32.mrb[35].mxu1  ;;  %1134 = vmatpush1.bf16.msra.mxu1 %v1086_v15  ;;  %v1078_v44 = vmax.f32 %v1060_v24, 0.0  ;;  %v1077_v32 = vmax.f32 %v1009_v25, 0.0 }
 0x3e9   : > { %v1080_v42 = vmax.f32 %v1011_v29, 0.0  ;;  %v1066_v43 = vadd.f32 %v1065_v41, %v1812_v5  ;;  %v1079_v46 = vmax.f32 %v1062_v28, 0.0 }
 0x3ea   : > { %v1082_v45 = vmax.f32 %v1064_v36, 0.0  ;;  %v1081_v0 = vmax.f32 %v1013_v37, 0.0 }
 0x3eb   : > { %v1088_v47 = vpack.c.bf16 %v1080_v42, %v1076_v2  ;;  %v1083_v48 = vmax.f32 %v1066_v43, 0.0 }
 0x3ec   : > { %v1090_v49 = vpack.c.bf16 %v1082_v45, %v1078_v44  ;;  %v1089_v50 = vpack.c.bf16 %v1081_v0, %v1077_v32 }
 0x3ed   : > { %v1091_v51 = vpack.c.bf16 %v1083_v48, %v1079_v46 }
 0x3ee   : > { %1094 = vmatprep.subr.bf16.mxu0 %v1089_v50 }
 0x3ef   : > { %1135 = vmatprep.subr.bf16.mxu1 %v1091_v51  ;;  %1095 = vmatpush1.bf16.msra.mxu0 %v1088_v47 }
 0x3f0   : > { %1136 = vmatpush1.bf16.msra.mxu1 %v1090_v49 }
 0x3f2   : > { %1336 = vmatmul.mubr.msk.bf16.vlgmr.msra.gmra.mrb[36].mxu0 %vm527_vm2, %v1833_v60 }
 0x3f3   : > { %1337 = vmatmul.mubr.msk.bf16.vlgmr.msra.gmra.mrb[36].mxu1 %vm527_vm2, %v1833_v60 }
 0x4c5   : > { %v1126_v5 = vpop.f32.mrb[36].mxu0 }
 0x4c6   : > { %v1127_v52 = vadd.f32 %v1126_v5, %v1861_v4  ;;  %v1167_v53 = vpop.f32.mrb[36].mxu1  ;;  %v1128_v31 = vpop.f32.mrb[37].mxu0 }
 0x4c7   : > { %v1168_v63 = vadd.f32 %v1167_v53, %v1861_v4  ;;  %v1129_v54 = vadd.f32 %v1128_v31, %v1861_v4  ;;  %v1169_v55 = vpop.f32.mrb[37].mxu1  ;;  %v1130_v56 = vpop.f32.mrb[38].mxu0 }
 0x4c8   : > { %v1174_v35 = vmul.f32 0.5, %v1127_v52  ;;  %v1170_v57 = vadd.f32 %v1169_v55, %v1861_v4  ;;  %v1171_v58 = vpop.f32.mrb[38].mxu1  ;;  %v1131_v61 = vpop.f32.mrb[39].mxu0 }
 0x4c9   : > { %v1176_v62 = vmul.f32 0.5, %v1168_v63  ;;  %v1175_v17 = vmul.f32 0.5, %v1129_v54  ;;  %v1172_v38 = vpop.f32.mrb[39].mxu1 }
 0x4ca   : > { %1406 = vtanh.f32 %v1174_v35  ;;  %v1177_v60 = vmul.f32 0.5, %v1170_v57 }
 0x4cb   : > { %1408 = vtanh.f32 %v1176_v62 }
 0x4cc   : > { %1410 = vtanh.f32 %v1175_v17 }
 0x4cd   : > { %1412 = vtanh.f32 %v1177_v60 }
 0x4d4   : > { %v1407_v3 = vpop.eup %1406 }
 0x4d5   : > { %v1409_v6 = vpop.eup %1408  ;;  %v1182_v1 = vadd.f32 1.0, %v1407_v3 }
 0x4d6   : > { %v1411_v7 = vpop.eup %1410  ;;  %v1184_v8 = vadd.f32 1.0, %v1409_v6 }
 0x4d7   : > { %v1413_v9 = vpop.eup %1412  ;;  %v1186_v33 = vmul.f32 0.5, %v1182_v1  ;;  %v1183_v4 = vadd.f32 1.0, %v1411_v7 }
 0x4d8   : > { %v1188_v26 = vmul.f32 0.5, %v1184_v8  ;;  %v1185_v10 = vadd.f32 1.0, %v1413_v9 }
 0x4d9   : > { %v1187_v11 = vmul.f32 0.5, %v1183_v4 }
 0x4da   : > { %v1189_v12 = vmul.f32 0.5, %v1185_v10 }
 0x4db   : > { %v1194_v13 = vcombine.low %v1186_v33, %v1187_v11 }
 0x4dc   : > { %v1195_v14 = vcombine.low %v1188_v26, %v1189_v12 }
 0x4dd   : > { %v1202_v39 = vrot.slane %v1194_v13, %v1879_v22 }
 0x4de   : > { %v1209_v15 = vrot.slane %v1195_v14, %v1879_v22 }
 0x4e0   : > { %v1210_v16 = vcombine.low %v1202_v39, %v1209_v15 }
 0x4e2   : > { %v1217_v18 = vrot.slane %v1210_v16, %v1879_v22 }
 0x4e4   : > { %1219 = vst.msk [vmem:[%s1897_s30 + $0x4] sm:$0xf] %vm1890_vm3, %v1217_v18 }
 0x4e5   : > { %1457 = shalt.err (!%p1454_p3)
}
 0x4e6   : > { %s1458_s12 = scalar_lea.hbm %s1944_s13, 128  ;;  %s1462_s22 = scalar_lea.hbm %s1998_s7, 256 }
 0x4e7   : > { %p1459_p5 = scmp.ne.s32.totalorder %s1944_s13, %s1458_s12  ;;  %p1463_p9 = scmp.lt.u32.totalorder %s1944_s13, %s1998_s7 }
 0x4e8   : > { %p1464_p0 = scmp.lt.u32.totalorder %s1462_s22, %s1458_s12  ;;  %p1466_p6 = scmp.lt.u32.totalorder %s1458_s12, %s1944_s13 }
 0x4e9   : > { %p1460_p7 = pnand %p1459_p5, %p2008_p11 }
 0x4ea   : > { %p1465_p2 = por %p1464_p0, %p1463_p9 }
 0x4eb   : > { %p1461_p8 = pneg %p1460_p7 }
 0x4ec   : > { %p1467_p12 = por %p1466_p6, %p1465_p2 }
 0x4ee   : > { %p1468_p13 = pnand %p1467_p12, %p1461_p8 }
 0x4f0   : > { %1471 = shalt.err (!%p1468_p13)
}
 0x4f1   : > { %1347 = dma.vmem_to_hbm [thread:$0]  (%p2008_p11), %s1946_s10, 128, %s1944_s13, %s1221_s21  }
 0x4f2 PF: > { %s1247_s9 = sand.u32 1, %s1498_s26   ;;  %p2009_p4 = scmp.ne.s32.totalorder %s2003_s15, 0 }
 0x4f3   : > { %p2010_p10 = scmp.ge.s32.totalorder %s1510_s29, 2  ;;  %s1248_s17 = scalar_lea.sflag [#allocation5], %s1247_s9 }
 0x4f5   : > { %p1354_p1 = pnand %p2010_p10, %p2009_p4 }
 0x4f7   : > { %1493 = dma.done.wait (!%p1354_p1), %s1248_s17, 128  }
 0x4f8   : > { %1495 = vsyncadd (!%p1354_p1), %s1248_s17, 4294967168  ;;  %p22_p3 = scmp.ge.s32.totalorder %s1587_s8, 4   ;;  %s2011_s26 = smov %s1502_s27 }
 0x4f9   : > { %s2012_s27 = smov %s1506_s28  ;;  %s2013_s28 = smov %s1599_s11 }
 0x4fa   : > { %s2014_s29 = smov %s1587_s8  ;;  %24 = sbr.rel (!%p22_p3) target bundleno = 8 (0x8), region = 93 }
 0x501   :  { %1253 = vsyncpa [#allocation4], 1 }
 0x502   :  { %1255 = vsyncpa [#allocation4 + $0x1], 1 }
 0x503   :  { %1256 = vsyncpa [#allocation5], 1 }
 0x504   :  { %1258 = vsyncpa [#allocation5 + $0x1], 1 }

</bundles_post_ra>
